<compile_context>
chip_gen: v7x
topology: tpu7x:2x2x1
jax: 0.10.0
libtpu: 0.0.40
codegen_flags: <defaults>
</compile_context>

<pallas_src>
import jax
import jax.numpy as jnp
from jax.experimental import pallas as pl
from jax.experimental.pallas import tpu as pltpu


def _se_kernel(x_ref, w1t_ref, b1_ref, w2t_ref, b2_ref, o_ref):
    # x_ref: (Nb, C, HWp)  w1t: (C, Cr)  b1: (1, Cr)  w2t: (Cr, C)  b2: (1, C)
    x = x_ref[...]                                            # native dtype

    # Sum-pool over spatial positions (f32 accumulation).  The 1/HW mean scale
    # is pre-folded into w1t; zero-padded lanes contribute nothing to the sum.
    pooled = jnp.sum(x, axis=-1, dtype=jnp.float32)           # (Nb, C)

    # 1x1 conv (no bias) + folded BN1 + ReLU  -- batched over Nb.
    h = jnp.dot(pooled, w1t_ref[...],
                preferred_element_type=jnp.float32) + b1_ref[...]   # (Nb, Cr)
    h = jnp.maximum(h, 0.0)

    # 1x1 conv (no bias) + folded BN2 + hsigmoid.
    s = jnp.dot(h, w2t_ref[...],
                preferred_element_type=jnp.float32) + b2_ref[...]   # (Nb, C)
    s = jnp.clip(s + 3.0, 0.0, 6.0) * (1.0 / 6.0)             # hsigmoid

    # Broadcast the gate over the lane (spatial) axis; multiply in x's dtype.
    o_ref[...] = x * s.astype(x.dtype)[:, :, None]


def se_module(x_nchw, w1_eff, b1_eff, w2_eff, b2_eff, *,
              vmem_tile_budget=32 << 20):
    """x_nchw: (N, C, H, W).  Returns (N, C, H, W)."""
    N, C, H, W = x_nchw.shape
    HW = H * W
    Cr = w1_eff.shape[0]
    dtype = x_nchw.dtype
    dbytes = jnp.dtype(dtype).itemsize

    # Lane-dense spatial axis: pad HW up to a multiple of 128 so the
    # (dominant) stores are unmasked.  Zero padding is harmless: it adds 0 to
    # the pooled sum and the padded outputs (0 * s) are sliced off below.
    HWp = HW if HW % 128 == 0 else ((HW + 127) // 128) * 128

    # Batch Nb images per grid step to amortize per-step overhead, sized so
    # (in + out) x double-buffer stays under the VMEM budget on all chips.
    per_img = 4 * C * HWp * dbytes
    nb = max(1, int(vmem_tile_budget) // per_img)
    nb = min(nb, N)
    if N > 1:
        nb = min(nb, (N + 1) // 2)      # keep grid >= 2 (v7x megacore)
    n_grid = -(-N // nb)
    Np = n_grid * nb

    x = x_nchw.reshape(N, C, HW)
    if Np != N or HWp != HW:
        x = jnp.pad(x, ((0, Np - N), (0, 0), (0, HWp - HW)))

    # Fold the 1/HW pooling scale into the first folded conv weight and
    # pre-transpose both weights so the kernel does (Nb,C)@(C,Cr), (Nb,Cr)@(Cr,C).
    w1t = (w1_eff.T * (1.0 / HW)).astype(jnp.float32)         # (C, Cr)
    w2t = w2_eff.T.astype(jnp.float32)                        # (Cr, C)
    b1 = b1_eff.reshape(1, Cr).astype(jnp.float32)
    b2 = b2_eff.reshape(1, C).astype(jnp.float32)

    out = pl.pallas_call(
        _se_kernel,
        out_shape=jax.ShapeDtypeStruct((Np, C, HWp), dtype),
        grid_spec=pltpu.PrefetchScalarGridSpec(
            num_scalar_prefetch=0,
            grid=(n_grid,),
            in_specs=[
                pl.BlockSpec((nb, C, HWp), lambda n: (n, 0, 0)),
                pl.BlockSpec((C, Cr), lambda n: (0, 0)),   # resident across steps
                pl.BlockSpec((1, Cr), lambda n: (0, 0)),
                pl.BlockSpec((Cr, C), lambda n: (0, 0)),
                pl.BlockSpec((1, C), lambda n: (0, 0)),
            ],
            out_specs=pl.BlockSpec((nb, C, HWp), lambda n: (n, 0, 0)),
        ),
        compiler_params=pltpu.CompilerParams(
            dimension_semantics=("parallel",),
            vmem_limit_bytes=48 << 20),
    )(x, w1t, b1, w2t, b2)

    if Np != N or HWp != HW:
        out = out[:N, :, :HW]
    return out.reshape(N, C, H, W)


def fold_bn(w, gamma, beta, mean, var, eps=1e-5):
    """Fold eval-mode BatchNorm into a preceding bias-free 1x1 conv."""
    scale = gamma / jnp.sqrt(var + eps)                      # (Cout,)
    w_eff = scale[:, None] * w                               # (Cout, Cin)
    b_eff = (beta - scale * mean)[:, None]                   # (Cout, 1)
    return w_eff.astype(jnp.float32), b_eff.astype(jnp.float32)


def reference_se(x, w1_eff, b1_eff, w2_eff, b2_eff):
    """Pure-JAX reference for correctness checking."""
    pooled = jnp.mean(x, axis=(2, 3))                        # (N, C)
    h = jnp.maximum(pooled @ w1_eff.T + b1_eff[:, 0], 0.0)   # (N, Cr)
    s = h @ w2_eff.T + b2_eff[:, 0]                          # (N, C)
    s = jnp.clip(s + 3.0, 0.0, 6.0) / 6.0
    return x * s[:, :, None, None]


if __name__ == "__main__":
    # Module config: in_size=8, reduction=4  ->  hidden = 2
    N, C, H, W = 2, 8, 16, 16
    Cr = C // 4

    key = jax.random.PRNGKey(0)
    kx, kw1, kw2, kb = jax.random.split(key, 4)
    x = jax.random.normal(kx, (N, C, H, W), dtype=jnp.float32)

    # Deterministic synthetic parameters (shapes follow the module __init__).
    w1 = jax.random.normal(kw1, (Cr, C), dtype=jnp.float32) * 0.3   # Conv2d(C, Cr, 1, bias=False)
    w2 = jax.random.normal(kw2, (C, Cr), dtype=jnp.float32) * 0.3   # Conv2d(Cr, C, 1, bias=False)
    kb1, kb2, kb3, kb4 = jax.random.split(kb, 4)
    g1 = 1.0 + 0.1 * jax.random.normal(kb1, (Cr,), dtype=jnp.float32)
    be1 = 0.1 * jax.random.normal(kb2, (Cr,), dtype=jnp.float32)
    m1 = 0.05 * jnp.arange(Cr, dtype=jnp.float32)
    v1 = 1.0 + 0.02 * jnp.arange(Cr, dtype=jnp.float32)
    g2 = 1.0 + 0.1 * jax.random.normal(kb3, (C,), dtype=jnp.float32)
    be2 = 0.1 * jax.random.normal(kb4, (C,), dtype=jnp.float32)
    m2 = 0.05 * jnp.arange(C, dtype=jnp.float32)
    v2 = 1.0 + 0.02 * jnp.arange(C, dtype=jnp.float32)

    w1_eff, b1_eff = fold_bn(w1, g1, be1, m1, v1)
    w2_eff, b2_eff = fold_bn(w2, g2, be2, m2, v2)

    out = se_module(x, w1_eff, b1_eff, w2_eff, b2_eff)
    out = jax.block_until_ready(out)

    ref = reference_se(x, w1_eff, b1_eff, w2_eff, b2_eff)
    assert out.shape == (N, C, H, W)
    assert jnp.allclose(out, ref, atol=1e-5, rtol=1e-5), "mismatch vs reference"

    print("KERNEL_OK")
</pallas_src>

<mosaic_0001>
module attributes {stable_mosaic.version = 11 : i64} {
  func.func @_se_kernel(%arg0: i32, %arg1: memref<1x8x256xf32, #tpu.memory_space<vmem>>, %arg2: memref<8x2xf32, #tpu.memory_space<vmem>>, %arg3: memref<1x2xf32, #tpu.memory_space<vmem>>, %arg4: memref<2x8xf32, #tpu.memory_space<vmem>>, %arg5: memref<1x8xf32, #tpu.memory_space<vmem>>, %arg6: memref<1x8x256xf32, #tpu.memory_space<vmem>>) attributes {dimension_semantics = [#tpu.dimension_semantics<parallel>], iteration_bounds = array<i64: 2>, scalar_prefetch = 0 : i64, scratch_operands = 0 : i64, tpu.core_type = #tpu.core_type<tc>, window_params = [{transform_indices = @transform_0, window_bounds = array<i64: 1, 8, 256>}, {pipeline_mode = #tpu.pipeline_mode<synchronous>, transform_indices = @transform_1, window_bounds = array<i64: 8, 2>}, {pipeline_mode = #tpu.pipeline_mode<synchronous>, transform_indices = @transform_2, window_bounds = array<i64: 1, 2>}, {pipeline_mode = #tpu.pipeline_mode<synchronous>, transform_indices = @transform_3, window_bounds = array<i64: 2, 8>}, {pipeline_mode = #tpu.pipeline_mode<synchronous>, transform_indices = @transform_4, window_bounds = array<i64: 1, 8>}, {transform_indices = @transform_5, window_bounds = array<i64: 1, 8, 256>}]} {
    %c0 = arith.constant 0 : index
    %c0_0 = arith.constant 0 : index
    %c0_1 = arith.constant 0 : index
    %0 = vector.load %arg1[%c0, %c0_0, %c0_1] : memref<1x8x256xf32, #tpu.memory_space<vmem>>, vector<1x8x256xf32>
    %cst = arith.constant dense<0.000000e+00> : vector<1x8xf32>
    %1 = vector.multi_reduction <add>, %0, %cst [2] : vector<1x8x256xf32> to vector<1x8xf32>
    %c0_2 = arith.constant 0 : index
    %c0_3 = arith.constant 0 : index
    %2 = vector.load %arg2[%c0_2, %c0_3] : memref<8x2xf32, #tpu.memory_space<vmem>>, vector<8x2xf32>
    %cst_4 = arith.constant dense<0.000000e+00> : vector<1x2xf32>
    %3 = tpu.matmul %1, %2, %cst_4 {dimension_numbers = #tpu.dot_dimension_numbers<[1], [0], [0], [1], [0, 0, 1, 1], [], []>} : vector<1x8xf32>, vector<8x2xf32>, vector<1x2xf32> -> vector<1x2xf32>
    %c0_5 = arith.constant 0 : index
    %c0_6 = arith.constant 0 : index
    %4 = vector.load %arg3[%c0_5, %c0_6] : memref<1x2xf32, #tpu.memory_space<vmem>>, vector<1x2xf32>
    %5 = arith.addf %3, %4 : vector<1x2xf32>
    %cst_7 = arith.constant 0.000000e+00 : f32
    %6 = vector.broadcast %cst_7 : f32 to vector<1x2xf32>
    %7 = arith.maximumf %5, %6 : vector<1x2xf32>
    %c0_8 = arith.constant 0 : index
    %c0_9 = arith.constant 0 : index
    %8 = vector.load %arg4[%c0_8, %c0_9] : memref<2x8xf32, #tpu.memory_space<vmem>>, vector<2x8xf32>
    %cst_10 = arith.constant dense<0.000000e+00> : vector<1x8xf32>
    %9 = tpu.matmul %7, %8, %cst_10 {dimension_numbers = #tpu.dot_dimension_numbers<[1], [0], [0], [1], [0, 0, 1, 1], [], []>} : vector<1x2xf32>, vector<2x8xf32>, vector<1x8xf32> -> vector<1x8xf32>
    %c0_11 = arith.constant 0 : index
    %c0_12 = arith.constant 0 : index
    %10 = vector.load %arg5[%c0_11, %c0_12] : memref<1x8xf32, #tpu.memory_space<vmem>>, vector<1x8xf32>
    %11 = arith.addf %9, %10 : vector<1x8xf32>
    %cst_13 = arith.constant 3.000000e+00 : f32
    %12 = vector.broadcast %cst_13 : f32 to vector<1x8xf32>
    %13 = arith.addf %11, %12 : vector<1x8xf32>
    %cst_14 = arith.constant 0.000000e+00 : f32
    %cst_15 = arith.constant 6.000000e+00 : f32
    %14 = vector.broadcast %cst_14 : f32 to vector<1x8xf32>
    %15 = arith.maximumf %14, %13 : vector<1x8xf32>
    %16 = vector.broadcast %cst_15 : f32 to vector<1x8xf32>
    %17 = arith.minimumf %16, %15 : vector<1x8xf32>
    %cst_16 = arith.constant 0.166666672 : f32
    %18 = vector.broadcast %cst_16 : f32 to vector<1x8xf32>
    %19 = arith.mulf %17, %18 : vector<1x8xf32>
    %20 = vector.shape_cast %19 : vector<1x8xf32> to vector<1x8x1xf32>
    %21 = vector.broadcast %20 : vector<1x8x1xf32> to vector<1x8x256xf32>
    %22 = arith.mulf %0, %21 : vector<1x8x256xf32>
    %c0_17 = arith.constant 0 : index
    %c0_18 = arith.constant 0 : index
    %c0_19 = arith.constant 0 : index
    %23 = vector.load %arg6[%c0_17, %c0_18, %c0_19] : memref<1x8x256xf32, #tpu.memory_space<vmem>>, vector<1x8x256xf32>
    tpu.vector_store %arg6[%c0_17, %c0_18, %c0_19], %22 {strides = array<i32>} : memref<1x8x256xf32, #tpu.memory_space<vmem>>, vector<1x8x256xf32>,
    return
  }
  func.func @transform_0(%arg0: i32) -> (i32, i32, i32) {
    %c0_i32 = arith.constant 0 : i32
    %c0_i32_0 = arith.constant 0 : i32
    %c0_i32_1 = arith.constant 0 : i32
    return %arg0, %c0_i32, %c0_i32_0 : i32, i32, i32
  }
  func.func @transform_1(%arg0: i32) -> (i32, i32) {
    %c0_i32 = arith.constant 0 : i32
    %c0_i32_0 = arith.constant 0 : i32
    %c0_i32_1 = arith.constant 0 : i32
    return %c0_i32, %c0_i32_0 : i32, i32
  }
  func.func @transform_2(%arg0: i32) -> (i32, i32) {
    %c0_i32 = arith.constant 0 : i32
    %c0_i32_0 = arith.constant 0 : i32
    %c0_i32_1 = arith.constant 0 : i32
    return %c0_i32, %c0_i32_0 : i32, i32
  }
  func.func @transform_3(%arg0: i32) -> (i32, i32) {
    %c0_i32 = arith.constant 0 : i32
    %c0_i32_0 = arith.constant 0 : i32
    %c0_i32_1 = arith.constant 0 : i32
    return %c0_i32, %c0_i32_0 : i32, i32
  }
  func.func @transform_4(%arg0: i32) -> (i32, i32) {
    %c0_i32 = arith.constant 0 : i32
    %c0_i32_0 = arith.constant 0 : i32
    %c0_i32_1 = arith.constant 0 : i32
    return %c0_i32, %c0_i32_0 : i32, i32
  }
  func.func @transform_5(%arg0: i32) -> (i32, i32, i32) {
    %c0_i32 = arith.constant 0 : i32
    %c0_i32_0 = arith.constant 0 : i32
    %c0_i32_1 = arith.constant 0 : i32
    return %arg0, %c0_i32, %c0_i32_0 : i32, i32, i32
  }
}

</mosaic_0001>

<bundles_post_ra>
// kernel: tpu_custom_call.1
= control target key start
LH: loop header
LB: loop body
LE: loop exit
PB: predicated region body
PF: predicated region fallthrough
CT: control target
= control target key end

     0   :  { %10 = vsyncpa [#allocation3], 0  ;;  %s899_s0 = inlined_call_operand.hbm [shape: f32[2,8,256], index: 0, kind: input, shape index: {}]   ;;  %s900_s1 = inlined_call_operand.vmem [shape: f32[8,2], index: 1, kind: input, shape index: {}]   ;;  %s901_s2 = inlined_call_operand.vmem [shape: f32[1,2], index: 2, kind: input, shape index: {}]   ;;  %s902_s3 = inlined_call_operand.vmem [shape: f32[2,8], index: 3, kind: input, shape index: {}]   ;;  %s903_s4 = inlined_call_operand.vmem [shape: f32[1,8], index: 4, kind: input, shape index: {}]   ;;  %s904_s5 = inlined_call_operand.hbm [shape: f32[2,8,256], index: 5, kind: output, shape index: {}]  }
   0x1   :  { %12 = vsyncpa [#allocation3 + $0x1], 0 }
   0x2   :  { %13 = vsyncpa [#allocation4], 0 }
   0x3   :  { %15 = vsyncpa [#allocation4 + $0x1], 0  ;;  %s722_s18 = smov 0   ;;  %s724_s19 = smov 0  }
   0x4   :  { %s726_s20 = smov 0   ;;  %s728_s21 = smov 0  }
   0x5 LB: > { %s743_s22 = sadd.s32 4294967295, %s686_s21   ;;  %s509_s23 = sadd.s32 4294967294, %s686_s21   ;;  %s686_s21 = sphi %s728_s21, %s919_s21   ;;  %s682_s20 = sphi %s726_s20, %s918_s20   ;;  %s678_s19 = sphi %s724_s19, %s917_s19   ;;  %s674_s18 = sphi %s722_s18, %s916_s18  }
   0x6   : > { %s747_s24 = sadd.s32 1, %s686_s21   ;;  %s28_s25 = sadd.s32 1, %s682_s20 }
   0x7   : > { %s25_s26 = ssub.s32 %s686_s21, %s747_s24  ;;  %p35_p0 = scmp.ne.s32.totalorder %s682_s20, %s678_s19 }
   0x8   : > { %p26_p1 = scmp.eq.s32.totalorder %s25_s26, 0  ;;  %p36_p2 = scmp.eq.s32.totalorder %s686_s21, 0 }
   0x9   : > { %p41_p3 = scmp.ne.s32.totalorder %s678_s19, %s674_s18  ;;  %p42_p4 = scmp.eq.s32.totalorder %s743_s22, 0 }
   0xa   : > { %s759_s27 = scalar_select %p26_p1, %s682_s20, %s28_s25  }
   0xb   : > { %p761_p5 = por %p36_p2, %p35_p0  ;;  %p765_p6 = por %p42_p4, %p41_p3 }
   0xc   : > { %p149_p7 = scmp.eq.s32.totalorder %s743_s22, 1  ;;  %p155_p8 = scmp.eq.s32.totalorder %s509_s23, 1 }
   0xd   : > { %p554_p10 = scmp.lt.s32.totalorder %s686_s21, 2  ;;  %s187_s7 = sand.u32 1, %s682_s20  }
   0xe   : > { %p772_p11 = por %p149_p7, %p35_p0  ;;  %p776_p12 = por %p155_p8, %p41_p3 }
   0xf   : > { %s526_s8 = sshll.u32 %s686_s21, 8  ;;  %s512_s9 = sshll.u32 %s187_s7, 4 }
  0x10   : > { %s908_s30 = scalar_select %p772_p11, 1, 0 }
  0x11   : > { %s909_s6 = scalar_select %p776_p12, 1, 0 }
  0x12   : > { %s785_s12 = scalar_lea.hbm %s899_s0, %s526_s8  ;;  %s191_s13 = scalar_lea.vmem [#allocation2], %s512_s9 }
  0x13   : > { %s199_s14 = sshll.u32 %s191_s13, 4  ;;  %p789_p13 = pnand %p554_p10, %p761_p5  ;;  %s793_s14 = int_to_ptr.vmem [resolvable:$true] %s199_s14 }
  0x14   : > { %s188_s16 = scalar_lea.sflag [#allocation3], %s187_s7  ;;  %s590_s17 = scalar_lea.hbm %s785_s12, 256 }
  0x15   : > { %p591_p2 = scmp.ne.s32.totalorder %s785_s12, %s590_s17  ;;  %p592_p3 = pneg %p789_p13 }
  0x16   : > { %s595_s26 = scalar_lea.hbm %s899_s0, 512  ;;  %p596_p5 = scmp.lt.u32.totalorder %s785_s12, %s899_s0 }
  0x17   : > { %p593_p4 = pnand %p592_p3, %p591_p2  ;;  %p597_p8 = scmp.lt.u32.totalorder %s595_s26, %s590_s17 }
  0x18   : > { %p599_p9 = scmp.lt.u32.totalorder %s590_s17, %s785_s12 }
  0x19   : > { %p594_p7 = pneg %p593_p4  ;;  %p598_p10 = por %p597_p8, %p596_p5 }
  0x1b   : > { %p600_p0 = por %p599_p9, %p598_p10 }
  0x1d   : > { %p601_p1 = pnand %p600_p0, %p594_p7 }
  0x1f   : > { %604 = shalt.err (!%p601_p1)
}
  0x20   : > { %s605_s7 = scalar_lea.vmem %s793_s14, 256  ;;  %s688_s9 = smov [#allocation2]  }
  0x21   : > { %p606_p2 = scmp.ne.s32.totalorder %s793_s14, %s605_s7  ;;  %s610_s10 = sshll.u32 %s688_s9, 4  ;;  %s611_s10 = int_to_ptr.vmem [resolvable:$false] %s610_s10 }
  0x22   : > { %s612_s11 = scalar_lea.vmem %s611_s10, 512  ;;  %p613_p11 = scmp.lt.s32.totalorder %s793_s14, %s611_s10 }
  0x23   : > { %p608_p4 = pnand %p606_p2, %p592_p3  ;;  %p614_p5 = scmp.lt.s32.totalorder %s612_s11, %s605_s7 }
  0x25   : > { %p609_p12 = pneg %p608_p4  ;;  %p615_p8 = por %p614_p5, %p613_p11 }
  0x27   : > { %p616_p9 = pnand %p615_p8, %p609_p12 }
  0x29   : > { %619 = shalt.err (!%p616_p9)
}
  0x2a   : > { %549 = dma.hbm_to_vmem [thread:$0]  (!%p789_p13), %s785_s12, 256, %s793_s14, %s188_s16  }
  0x2b   : > { %p911_p0 = scmp.lt.s32.totalorder %s686_s21, 3  ;;  %p912_p1 = scmp.ge.s32.totalorder %s686_s21, 1 }
  0x2d   : > { %p205_p3 = pnand %p912_p1, %p911_p0 }
  0x2e   : > { %s827_s13 = sand.u32 (!%p205_p3), 1, %s678_s19  }
  0x2f   : > { %208 = sbr.rel (%p205_p3) target bundleno = 773 (0x305), region = 40  ;;  %s516_s17 = sshll.u32 (!%p205_p3), %s827_s13, 4 }
  0x30   : > { %s211_s23 = scalar_lea.sflag (!%p205_p3), [#allocation3], %s827_s13  ;;  %s214_s15 = scalar_lea.vmem (!%p205_p3), [#allocation2], %s516_s17 }
  0x36   : > { %665 = dma.done.wait (%p765_p6), %s211_s23, 256  }
  0x37   : > { %667 = vsyncadd (%p765_p6), %s211_s23, 4294967040  ;;  %v241_v0 = vld [vmem:[%s214_s15] sm:$0xff]  ;;  %v242_v1 = vld [vmem:[%s214_s15 + $0x8] sm:$0xff]  ;;  %v689_v3 = vmov 0.0   ;;  %vm690_vm0 = vmmov 0   ;;  %v249_v5 = vlaneseq  ;;  %vm255_vm1 = vcmask 64512  }
  0x38   : > { %v243_v2 = vadd.f32 %v242_v1, %v241_v0  ;;  %532 = vmatprep.subr.mxu0 %v689_v3  ;;  %v246_v4 = vld [vmem:[%s900_s1] sm:$0xff]  ;;  %537 = vmatprep.subr.mxu1 %v689_v3  ;;  %vm335_vm2 = vcmask 1041408   ;;  %vm331_vm3 = vcmask 15360   ;;  %s527_s7 = sshll.u32 %s743_s22, 8  ;;  %s240_s9 = scalar_lea.vmem [#allocation5], %s516_s17 }
  0x39   : > { %533 = vmatpush3.msra.mxu0 %v246_v4  ;;  %534 = vmatprep.mubr.msk.f32.mxu0 %vm690_vm0, %v689_v3  ;;  %v250_v6 = vand.u32 127, %v249_v5  ;;  %v252_v7 = vshrl.u32 %v249_v5, 7  ;;  %v329_v11 = vld [vmem:[%s902_s3] sm:$0x3]  ;;  %s439_s10 = sshll.u32 %s240_s9, 4  ;;  %s855_s15 = scalar_lea.hbm %s904_s5, %s527_s7  ;;  %s857_s10 = int_to_ptr.vmem [resolvable:$true] %s439_s10 }
  0x3a   : > { %244 = vadd.xlane.f32.xlu0 %v243_v2  ;;  %539 = vmatprep.mubr.msk.f32.mxu1 %vm690_vm0, %v689_v3  ;;  %v247_v12 = vld [vmem:[%s901_s2] sm:$0x1]  ;;  %s425_s12 = scalar_lea.sflag [#allocation4], %s827_s13  ;;  %s620_s22 = scalar_lea.vmem %s857_s10, 256 }
  0x3b   : > { %v253_v8 = vsub.s32 %v250_v6, %v252_v7  ;;  %538 = vmatpush3.msk.msra.mxu1 %vm335_vm2, %v329_v11  ;;  %v330_v17 = vld [vmem:[%s903_s4] sm:$0x1]  ;;  %v415_v24 = vsub.s32 0, %v252_v7  ;;  %p621_p6 = scmp.ne.s32.totalorder %s857_s10, %s620_s22  ;;  %p913_p11 = scmp.ne.s32.totalorder %s908_s30, 0 }
  0x3c   : > { %s691_s17 = smov [#allocation5]  }
  0x3d   : > { %p622_p12 = pnand %p621_p6, %p913_p11  ;;  %s624_s14 = sshll.u32 %s691_s17, 4  ;;  %s625_s14 = int_to_ptr.vmem [resolvable:$false] %s624_s14 }
  0x3e   : > { %s626_s29 = scalar_lea.vmem %s625_s14, 512  ;;  %p627_p7 = scmp.lt.s32.totalorder %s857_s10, %s625_s14 }
  0x3f   : > { %p623_p13 = pneg %p622_p12  ;;  %p628_p10 = scmp.lt.s32.totalorder %s626_s29, %s620_s22 }
  0x41   : > { %p629_p2 = por %p628_p10, %p627_p7 }
  0x43   : > { %p630_p4 = pnand %p629_p2, %p623_p13 }
  0xc7   : > { %v245_v9 = vpop.xlane.xlu0 %244 }
  0xc8   : > { %v254_v10 = vrot.slane %v245_v9, %v253_v8 }
  0xca   : > { %535 = vmatmul.mubr.msk.f32.vlgmr.msra.gmra.mrb[0].mxu0 %vm255_vm1, %v254_v10 }
 0x19d   : > { %v324_v13 = vpop.f32.mrb[0].mxu0 }
 0x19e   : > { %v325_v14 = vadd.f32 %v324_v13, %v247_v12  ;;  %v536_v15 = vpop.f32.mrb[1].mxu0 }
 0x1a0   : > { %v328_v16 = vmax.f32 %v325_v14, 0.0 }
 0x1a2   : > { %540 = vmatmul.mubr.msk.f32.vlgmr.msra.gmra.mrb[0].mxu1 %vm331_vm3, %v328_v16 }
 0x275   : > { %v405_v18 = vpop.f32.mrb[0].mxu1 }
 0x276   : > { %v406_v19 = vadd.f32 %v405_v18, %v330_v17  ;;  %v541_v20 = vpop.f32.mrb[1].mxu1 }
 0x278   : > { %v409_v21 = vadd.f32 3.0, %v406_v19 }
 0x27a   : > { %v410_v22 = vmax.f32 %v409_v21, 0.0 }
 0x27c   : > { %v411_v23 = vmin.f32 %v410_v22, 6.0 }
 0x27e   : > { %v412_v25 = vmul.f32 0.16666667, %v411_v23 }
 0x280   : > { %v416_v26 = vrot.slane %v412_v25, %v415_v24 }
 0x282   : > { %418 = vbcast.lane.b32.xlu0 %v416_v26, 256 }
 0x2f4   : > { %v419_v27 = vpop.permute.xlu0 %418 }
 0x2f5   : > { %v420_v28 = vmul.f32 %v419_v27, %v241_v0  ;;  %v421_v29 = vmul.f32 %v419_v27, %v242_v1 }
 0x2f7   : > { %422 = vst [vmem:[%s240_s9] sm:$0xff] %v420_v28  ;;  %423 = vst [vmem:[%s240_s9 + $0x8] sm:$0xff] %v421_v29 }
 0x2f8   : > { %633 = shalt.err (!%p630_p4)
}
 0x2f9   : > { %s634_s13 = scalar_lea.hbm %s855_s15, 256  ;;  %s638_s26 = scalar_lea.hbm %s904_s5, 512 }
 0x2fa   : > { %p635_p5 = scmp.ne.s32.totalorder %s855_s15, %s634_s13  ;;  %p639_p0 = scmp.lt.u32.totalorder %s855_s15, %s904_s5 }
 0x2fb   : > { %p640_p1 = scmp.lt.u32.totalorder %s638_s26, %s634_s13  ;;  %p642_p6 = scmp.lt.u32.totalorder %s634_s13, %s855_s15 }
 0x2fc   : > { %p636_p8 = pnand %p635_p5, %p913_p11 }
 0x2fd   : > { %p641_p3 = por %p640_p1, %p639_p0 }
 0x2fe   : > { %p637_p9 = pneg %p636_p8 }
 0x2ff   : > { %p643_p12 = por %p642_p6, %p641_p3 }
 0x301   : > { %p644_p13 = pnand %p643_p12, %p637_p9 }
 0x303   : > { %647 = shalt.err (!%p644_p13)
}
 0x304   : > { %544 = dma.vmem_to_hbm [thread:$0]  (%p913_p11), %s857_s10, 256, %s855_s15, %s425_s12  }
 0x305 PF: > { %s451_s7 = sand.u32 1, %s674_s18   ;;  %p914_p7 = scmp.ne.s32.totalorder %s909_s6, 0 }
 0x306   : > { %p915_p10 = scmp.ge.s32.totalorder %s686_s21, 2  ;;  %s452_s9 = scalar_lea.sflag [#allocation4], %s451_s7 }
 0x308   : > { %p551_p2 = pnand %p915_p10, %p914_p7 }
 0x30a   : > { %669 = dma.done.wait (!%p551_p2), %s452_s9, 256  }
 0x30b   : > { %671 = vsyncadd (!%p551_p2), %s452_s9, 4294967040  ;;  %p18_p4 = scmp.ge.s32.totalorder %s747_s24, 4   ;;  %s916_s18 = smov %s678_s19 }
 0x30c   : > { %s917_s19 = smov %s682_s20  ;;  %s918_s20 = smov %s759_s27 }
 0x30d   : > { %s919_s21 = smov %s747_s24  ;;  %20 = sbr.rel (!%p18_p4) target bundleno = 5 (0x5), region = 85 }
 0x314   :  { %457 = vsyncpa [#allocation3], 1 }
 0x315   :  { %459 = vsyncpa [#allocation3 + $0x1], 1 }
 0x316   :  { %460 = vsyncpa [#allocation4], 1 }
 0x317   :  { %462 = vsyncpa [#allocation4 + $0x1], 1 }

</bundles_post_ra>
